<compile_context>
chip_gen: v7x
topology: tpu7x:2x2x1
jax: 0.10.0
libtpu: 0.0.40
codegen_flags: <defaults>
</compile_context>

<pallas_src>
import functools

import numpy as np
import jax
import jax.numpy as jnp
from jax.experimental import pallas as pl
from jax.experimental.pallas import tpu as pltpu


def _leaky_relu(v, slope=0.01):
    return jnp.where(v > 0, v, slope * v)


def _round_up(n, m):
    return ((n + m - 1) // m) * m


def _cdiv(a, b):
    return (a + b - 1) // b


# --------------------------------------------------------------------------
# Kernel: fused 3-matmul MLP chain (per batch tile). bf16 operands, f32 acc.
# --------------------------------------------------------------------------
def prediction_mlp_kernel(xy_ref, w1, b1, w23, b23, w48, b48, o_ref, *,
                          compute_dtype):
    # L1 over cat(x, y) + LeakyReLU.
    h = jnp.dot(xy_ref[...], w1[...], preferred_element_type=jnp.float32) + b1[...]
    h = _leaky_relu(h)
    # Merged L2*L3 + LeakyReLU.
    h = jnp.dot(h.astype(compute_dtype), w23[...],
                preferred_element_type=jnp.float32) + b23[...]
    h = _leaky_relu(h)
    # Merged L4..L8 -> (TB, output_dim); output lane dim is NOT padded.
    out = jnp.dot(h.astype(compute_dtype), w48[...],
                  preferred_element_type=jnp.float32) + b48[...]
    o_ref[...] = out.astype(o_ref.dtype)


# --------------------------------------------------------------------------
# One-time parameter preparation: merge activation-free Linear runs (in f64),
# zero-pad the hidden lane dim to 128, cast matmul operands to bf16.
# --------------------------------------------------------------------------
def prepare_params(params, *, lane=128, compute_dtype=jnp.bfloat16):
    p = [(np.asarray(w, np.float64), np.asarray(b, np.float64)) for (w, b) in params]
    (w1, b1), (w2, b2), (w3, b3), (w4, b4), (w5, b5), (w6, b6), (w7, b7), (w8, b8) = p

    # L2*L3 -> one (H, H) matmul; fold bias: b' = b_prev @ W_next + b_next.
    w23 = w2 @ w3
    b23 = b2 @ w3 + b3

    # L4..L8 -> one (H, output_dim) matmul with folded biases.
    w48, b48 = w4, b4
    for (w, b) in ((w5, b5), (w6, b6), (w7, b7), (w8, b8)):
        b48 = b48 @ w + b
        w48 = w48 @ w

    H = w1.shape[1]
    Hp = _round_up(H, lane)

    def pad_cols(a, cols):
        return np.pad(a, ((0, 0), (0, cols - a.shape[1])))

    def pad_rows(a, rows):
        return np.pad(a, ((0, rows - a.shape[0]), (0, 0)))

    # Padded hidden channels stay exactly 0 through LeakyReLU (slope*0 == 0).
    w1 = pad_cols(w1, Hp)
    b1 = pad_cols(b1, Hp)
    w23 = pad_rows(pad_cols(w23, Hp), Hp)
    b23 = pad_cols(b23, Hp)
    w48 = pad_rows(w48, Hp)           # output dim intentionally left un-padded

    to_w = lambda a: jnp.asarray(a, compute_dtype)   # MXU operands -> bf16
    to_b = lambda a: jnp.asarray(a, jnp.float32)     # biases stay f32
    return (to_w(w1), to_b(b1), to_w(w23), to_b(b23), to_w(w48), to_b(b48))


def _choose_batch_tile(B):
    if B <= 8:
        return _round_up(max(B, 1), 8)
    # >= 2 grid steps so v7x megacore can split the batch; <= ~1024 rows/tile.
    steps = max(2, _cdiv(B, 1024))
    return _round_up(_cdiv(B, steps), 8)


# --------------------------------------------------------------------------
# Wrapper: batch-tiled pallas_call with VMEM-resident weights.
# --------------------------------------------------------------------------
@jax.jit
def prediction_forward(x, y, fused_params):
    """x: (B, dx), y: (B, dy) with dx + dy == input_dim. Returns (B, output_dim)."""
    w1, b1, w23, b23, w48, b48 = fused_params
    compute_dtype = w1.dtype
    B = x.shape[0]
    D = x.shape[1] + y.shape[1]
    Hp = w1.shape[1]
    O = w48.shape[1]

    # Concat once in the wrapper (tiny: B*D*2 bytes) so the kernel runs a
    # single (TB, D) @ (D, Hp) matmul for layer 1.
    xy = jnp.concatenate((x, y), axis=-1).astype(compute_dtype)

    TB = _choose_batch_tile(B)
    Bp = _round_up(B, TB)
    if Bp != B:
        xy = jnp.pad(xy, ((0, Bp - B), (0, 0)))
    grid = (Bp // TB,)

    def const_spec(a):
        # Full-array block, constant index map -> stays VMEM-resident.
        return pl.BlockSpec(a.shape, lambda i: (0, 0))

    # VMEM budget: resident weights single-buffered, activation tiles
    # double-buffered, plus headroom; clamp to the real device capacity.
    weight_bytes = sum(int(a.size) * a.dtype.itemsize for a in fused_params)
    act_bytes = TB * D * xy.dtype.itemsize + TB * O * 4
    vmem_limit = max(weight_bytes + 2 * act_bytes + (8 << 20), 16 << 20)
    try:
        vmem_limit = min(vmem_limit,
                         int(0.9 * pltpu.get_tpu_info().vmem_capacity_bytes))
    except Exception:
        vmem_limit = min(vmem_limit, 64 << 20)

    cost = pl.CostEstimate(
        flops=2 * Bp * (D * Hp + Hp * Hp + Hp * O),
        transcendentals=0,
        bytes_accessed=int(Bp * D * xy.dtype.itemsize + weight_bytes + Bp * O * 4),
    )

    out = pl.pallas_call(
        functools.partial(prediction_mlp_kernel, compute_dtype=compute_dtype),
        out_shape=jax.ShapeDtypeStruct((Bp, O), jnp.float32),
        grid=grid,
        in_specs=[
            pl.BlockSpec((TB, D), lambda i: (i, 0)),
            const_spec(w1), const_spec(b1),
            const_spec(w23), const_spec(b23),
            const_spec(w48), const_spec(b48),
        ],
        out_specs=pl.BlockSpec((TB, O), lambda i: (i, 0)),
        compiler_params=pltpu.CompilerParams(
            dimension_semantics=("parallel",),
            vmem_limit_bytes=int(vmem_limit),
        ),
        cost_estimate=cost,
    )(xy, w1, b1, w23, b23, w48, b48)

    return out if Bp == B else out[:B]


# --------------------------------------------------------------------------
# Param init (PyTorch-Linear-style; weights stored as (in, out)) + reference.
# --------------------------------------------------------------------------
def init_params(key, input_dim, hidden_dim, output_dim):
    dims = [
        (input_dim, hidden_dim),   # fc2: L1
        (hidden_dim, hidden_dim),  # fc2: L2
        (hidden_dim, hidden_dim),  # fc2: L3
        (hidden_dim, hidden_dim),  # fc2: L4
        (hidden_dim, hidden_dim),  # fc3: L5
        (hidden_dim, hidden_dim),  # fc3: L6
        (hidden_dim, hidden_dim),  # fc3: L7
        (hidden_dim, output_dim),  # fc3: L8
    ]
    params = []
    for (din, dout) in dims:
        key, kw, kb = jax.random.split(key, 3)
        bound = 1.0 / jnp.sqrt(jnp.float32(din))
        w = jax.random.uniform(kw, (din, dout), jnp.float32, -bound, bound)
        b = jax.random.uniform(kb, (1, dout), jnp.float32, -bound, bound)
        params.append((w, b))
    return params


def reference_forward(x, y, params):
    """Pure-JAX f32 reference on the ORIGINAL (unmerged, unpadded) 8-layer chain."""
    h = jnp.concatenate((x, y), axis=-1).reshape(x.shape[0], -1)
    acts_after = {0, 2}  # LeakyReLU after L1 and L3 (0-indexed)
    for i, (w, b) in enumerate(params):
        h = h @ w + b
        if i in acts_after:
            h = _leaky_relu(h)
    return h


if __name__ == "__main__":
    batch = 8
    input_dim = 32          # dx + dy
    hidden_dim = 32
    output_dim = 16
    dx, dy = 16, 16

    key = jax.random.PRNGKey(0)
    kx, ky, kp = jax.random.split(key, 3)
    x = jax.random.normal(kx, (batch, dx), jnp.float32)
    y = jax.random.normal(ky, (batch, dy), jnp.float32)
    params = init_params(kp, input_dim, hidden_dim, output_dim)

    fused = prepare_params(params)
    out = prediction_forward(x, y, fused)
    out = jax.block_until_ready(out)

    ref = reference_forward(x, y, params)
    assert out.shape == (batch, output_dim), out.shape
    # bf16 matmul operands (f32 accumulation) + merged layers vs. f32 reference
    # -> relaxed tolerance.
    err = float(jnp.max(jnp.abs(out - ref)))
    assert jnp.allclose(out, ref, atol=1e-1, rtol=1e-1), err

    print("KERNEL_OK")
</pallas_src>

<mosaic_0001>
module attributes {stable_mosaic.version = 11 : i64} {
  func.func @prediction_mlp_kernel(%arg0: i32, %arg1: memref<8x32xbf16, #tpu.memory_space<vmem>>, %arg2: memref<32x128xbf16, #tpu.memory_space<vmem>>, %arg3: memref<1x128xf32, #tpu.memory_space<vmem>>, %arg4: memref<128x128xbf16, #tpu.memory_space<vmem>>, %arg5: memref<1x128xf32, #tpu.memory_space<vmem>>, %arg6: memref<128x16xbf16, #tpu.memory_space<vmem>>, %arg7: memref<1x16xf32, #tpu.memory_space<vmem>>, %arg8: memref<8x16xf32, #tpu.memory_space<vmem>>) attributes {dimension_semantics = [#tpu.dimension_semantics<parallel>], iteration_bounds = array<i64: 1>, scalar_prefetch = 0 : i64, scratch_operands = 0 : i64, tpu.core_type = #tpu.core_type<tc>, window_params = [{transform_indices = @transform_0, window_bounds = array<i64: 8, 32>}, {pipeline_mode = #tpu.pipeline_mode<synchronous>, transform_indices = @transform_1, window_bounds = array<i64: 32, 128>}, {pipeline_mode = #tpu.pipeline_mode<synchronous>, transform_indices = @transform_2, window_bounds = array<i64: 1, 128>}, {pipeline_mode = #tpu.pipeline_mode<synchronous>, transform_indices = @transform_3, window_bounds = array<i64: 128, 128>}, {pipeline_mode = #tpu.pipeline_mode<synchronous>, transform_indices = @transform_4, window_bounds = array<i64: 1, 128>}, {pipeline_mode = #tpu.pipeline_mode<synchronous>, transform_indices = @transform_5, window_bounds = array<i64: 128, 16>}, {pipeline_mode = #tpu.pipeline_mode<synchronous>, transform_indices = @transform_6, window_bounds = array<i64: 1, 16>}, {transform_indices = @transform_7, window_bounds = array<i64: 8, 16>}]} {
    %c0 = arith.constant 0 : index
    %c0_0 = arith.constant 0 : index
    %0 = vector.load %arg1[%c0, %c0_0] : memref<8x32xbf16, #tpu.memory_space<vmem>>, vector<8x32xbf16>
    %c0_1 = arith.constant 0 : index
    %c0_2 = arith.constant 0 : index
    %1 = vector.load %arg2[%c0_1, %c0_2] : memref<32x128xbf16, #tpu.memory_space<vmem>>, vector<32x128xbf16>
    %cst = arith.constant dense<0.000000e+00> : vector<8x128xf32>
    %2 = tpu.matmul %0, %1, %cst {dimension_numbers = #tpu.dot_dimension_numbers<[1], [0], [0], [1], [0, 0, 1, 1], [], []>} : vector<8x32xbf16>, vector<32x128xbf16>, vector<8x128xf32> -> vector<8x128xf32>
    %c0_3 = arith.constant 0 : index
    %c0_4 = arith.constant 0 : index
    %3 = vector.load %arg3[%c0_3, %c0_4] : memref<1x128xf32, #tpu.memory_space<vmem>>, vector<1x128xf32>
    %4 = vector.broadcast %3 : vector<1x128xf32> to vector<8x128xf32>
    %5 = arith.addf %2, %4 : vector<8x128xf32>
    %cst_5 = arith.constant 0.000000e+00 : f32
    %6 = vector.broadcast %cst_5 : f32 to vector<8x128xf32>
    %7 = arith.cmpf ogt, %5, %6 : vector<8x128xf32>
    %cst_6 = arith.constant 0.00999999977 : f32
    %8 = vector.broadcast %cst_6 : f32 to vector<8x128xf32>
    %9 = arith.mulf %8, %5 : vector<8x128xf32>
    %10 = arith.select %7, %5, %9 : vector<8x128xi1>, vector<8x128xf32>
    %11 = arith.truncf %10 : vector<8x128xf32> to vector<8x128xbf16>
    %c0_7 = arith.constant 0 : index
    %c0_8 = arith.constant 0 : index
    %12 = vector.load %arg4[%c0_7, %c0_8] : memref<128x128xbf16, #tpu.memory_space<vmem>>, vector<128x128xbf16>
    %cst_9 = arith.constant dense<0.000000e+00> : vector<8x128xf32>
    %13 = tpu.matmul %11, %12, %cst_9 {dimension_numbers = #tpu.dot_dimension_numbers<[1], [0], [0], [1], [0, 0, 1, 1], [], []>} : vector<8x128xbf16>, vector<128x128xbf16>, vector<8x128xf32> -> vector<8x128xf32>
    %c0_10 = arith.constant 0 : index
    %c0_11 = arith.constant 0 : index
    %14 = vector.load %arg5[%c0_10, %c0_11] : memref<1x128xf32, #tpu.memory_space<vmem>>, vector<1x128xf32>
    %15 = vector.broadcast %14 : vector<1x128xf32> to vector<8x128xf32>
    %16 = arith.addf %13, %15 : vector<8x128xf32>
    %cst_12 = arith.constant 0.000000e+00 : f32
    %17 = vector.broadcast %cst_12 : f32 to vector<8x128xf32>
    %18 = arith.cmpf ogt, %16, %17 : vector<8x128xf32>
    %cst_13 = arith.constant 0.00999999977 : f32
    %19 = vector.broadcast %cst_13 : f32 to vector<8x128xf32>
    %20 = arith.mulf %19, %16 : vector<8x128xf32>
    %21 = arith.select %18, %16, %20 : vector<8x128xi1>, vector<8x128xf32>
    %22 = arith.truncf %21 : vector<8x128xf32> to vector<8x128xbf16>
    %c0_14 = arith.constant 0 : index
    %c0_15 = arith.constant 0 : index
    %23 = vector.load %arg6[%c0_14, %c0_15] : memref<128x16xbf16, #tpu.memory_space<vmem>>, vector<128x16xbf16>
    %cst_16 = arith.constant dense<0.000000e+00> : vector<8x16xf32>
    %24 = tpu.matmul %22, %23, %cst_16 {dimension_numbers = #tpu.dot_dimension_numbers<[1], [0], [0], [1], [0, 0, 1, 1], [], []>} : vector<8x128xbf16>, vector<128x16xbf16>, vector<8x16xf32> -> vector<8x16xf32>
    %c0_17 = arith.constant 0 : index
    %c0_18 = arith.constant 0 : index
    %25 = vector.load %arg7[%c0_17, %c0_18] : memref<1x16xf32, #tpu.memory_space<vmem>>, vector<1x16xf32>
    %26 = vector.broadcast %25 : vector<1x16xf32> to vector<8x16xf32>
    %27 = arith.addf %24, %26 : vector<8x16xf32>
    %c0_19 = arith.constant 0 : index
    %c0_20 = arith.constant 0 : index
    %28 = vector.load %arg8[%c0_19, %c0_20] : memref<8x16xf32, #tpu.memory_space<vmem>>, vector<8x16xf32>
    tpu.vector_store %arg8[%c0_19, %c0_20], %27 {strides = array<i32>} : memref<8x16xf32, #tpu.memory_space<vmem>>, vector<8x16xf32>,
    return
  }
  func.func @transform_0(%arg0: i32) -> (i32, i32) {
    %c0_i32 = arith.constant 0 : i32
    %c0_i32_0 = arith.constant 0 : i32
    return %arg0, %c0_i32 : i32, i32
  }
  func.func @transform_1(%arg0: i32) -> (i32, i32) {
    %c0_i32 = arith.constant 0 : i32
    %c0_i32_0 = arith.constant 0 : i32
    %c0_i32_1 = arith.constant 0 : i32
    return %c0_i32, %c0_i32_0 : i32, i32
  }
  func.func @transform_2(%arg0: i32) -> (i32, i32) {
    %c0_i32 = arith.constant 0 : i32
    %c0_i32_0 = arith.constant 0 : i32
    %c0_i32_1 = arith.constant 0 : i32
    return %c0_i32, %c0_i32_0 : i32, i32
  }
  func.func @transform_3(%arg0: i32) -> (i32, i32) {
    %c0_i32 = arith.constant 0 : i32
    %c0_i32_0 = arith.constant 0 : i32
    %c0_i32_1 = arith.constant 0 : i32
    return %c0_i32, %c0_i32_0 : i32, i32
  }
  func.func @transform_4(%arg0: i32) -> (i32, i32) {
    %c0_i32 = arith.constant 0 : i32
    %c0_i32_0 = arith.constant 0 : i32
    %c0_i32_1 = arith.constant 0 : i32
    return %c0_i32, %c0_i32_0 : i32, i32
  }
  func.func @transform_5(%arg0: i32) -> (i32, i32) {
    %c0_i32 = arith.constant 0 : i32
    %c0_i32_0 = arith.constant 0 : i32
    %c0_i32_1 = arith.constant 0 : i32
    return %c0_i32, %c0_i32_0 : i32, i32
  }
  func.func @transform_6(%arg0: i32) -> (i32, i32) {
    %c0_i32 = arith.constant 0 : i32
    %c0_i32_0 = arith.constant 0 : i32
    %c0_i32_1 = arith.constant 0 : i32
    return %c0_i32, %c0_i32_0 : i32, i32
  }
  func.func @transform_7(%arg0: i32) -> (i32, i32) {
    %c0_i32 = arith.constant 0 : i32
    %c0_i32_0 = arith.constant 0 : i32
    return %arg0, %c0_i32 : i32, i32
  }
}

</mosaic_0001>

<bundles_post_ra>
// kernel: prediction_forward.1
= control target key start
LH: loop header
LB: loop body
LE: loop exit
PB: predicated region body
PF: predicated region fallthrough
CT: control target
= control target key end

     0   :  { %v478_v1 = vmov 0.0   ;;  %vm479_vm0 = vmmov 0   ;;  %vm52_vm1 = vcmask 261120   ;;  %s623_s0 = inlined_call_operand.vmem [shape: bf16[8,32], index: 0, kind: input, shape index: {}]   ;;  %s624_s1 = inlined_call_operand.vmem [shape: bf16[32,128], index: 1, kind: input, shape index: {}]   ;;  %s625_s2 = inlined_call_operand.vmem [shape: f32[1,128], index: 2, kind: input, shape index: {}]   ;;  %s626_s3 = inlined_call_operand.vmem [shape: bf16[128,128], index: 3, kind: input, shape index: {}]   ;;  %s627_s4 = inlined_call_operand.vmem [shape: f32[1,128], index: 4, kind: input, shape index: {}]   ;;  %s628_s5 = inlined_call_operand.vmem [shape: bf16[128,16], index: 5, kind: input, shape index: {}]   ;;  %s629_s6 = inlined_call_operand.vmem [shape: f32[1,16], index: 6, kind: input, shape index: {}]   ;;  %s630_s7 = inlined_call_operand.hbm [shape: f32[8,16], index: 7, kind: output, shape index: {}]  }
   0x1   :  { %v436_v0 = vld [vmem:[%s624_s1] sm:$0xff]   ;;  %385 = vmatprep.subr.bf16.mxu0 %v478_v1  ;;  %393 = vmatprep.subr.bf16.mxu1 %v478_v1  ;;  %v437_v2 = vld [vmem:[%s624_s1 + $0x8] sm:$0xff]   ;;  %v440_v6 = vld [vmem:[%s626_s3 + $0x10] sm:$0xff]  }
   0x2   :  { %386 = vmatpush3.bf16.msra.mxu0 %v436_v0  ;;  %389 = vmatprep.mubr.msk.bf16.mxu0 %vm479_vm0, %v478_v1  ;;  %v438_v3 = vld [vmem:[%s626_s3] sm:$0xff]   ;;  %v439_v4 = vld [vmem:[%s626_s3 + $0x8] sm:$0xff]   ;;  %v441_v7 = vld [vmem:[%s626_s3 + $0x18] sm:$0xff]  }
   0x3   :  { %387 = vmatprep.subr.bf16.mxu0 %v478_v1  ;;  %409 = vmatprep.mubr.msk.bf16.mxu1 %vm479_vm0, %v478_v1  ;;  %v28_v5 = vld [vmem:[%s623_s0] sm:$0xf] }
   0x4   :  { %394 = vmatpush3.bf16.msra.mxu1 %v438_v3 }
   0x5   :  { %395 = vmatprep.subr.bf16.mxu1 %v478_v1 }
   0x6   :  { %388 = vmatpush3.bf16.msra.mxu0 %v437_v2 }
   0x7   :  { %413 = vmatprep.subr.bf16.mxu0 %v478_v1 }
   0x8   :  { %396 = vmatpush3.bf16.msra.mxu1 %v439_v4 }
   0x9   :  { %390 = vmatmul.mubr.msk.bf16.vlgmr.msra.gmra.mrb[0].mxu0 %vm52_vm1, %v28_v5  ;;  %397 = vmatprep.subr.bf16.mxu1 %v478_v1 }
   0xa   :  { %429 = vmatprep.mubr.msk.bf16.mxu0 %vm479_vm0, %v478_v1 }
   0xc   :  { %398 = vmatpush3.bf16.msra.mxu1 %v440_v6 }
   0xd   :  { %399 = vmatprep.subr.bf16.mxu1 %v478_v1 }
   0xe   :  { %12 = vsyncpa [#allocation3], 0  ;;  %v442_v8 = vld [vmem:[%s626_s3 + $0x20] sm:$0xff]   ;;  %v443_v9 = vld [vmem:[%s626_s3 + $0x28] sm:$0xff]   ;;  %vm326_vm4 = vcmask 130048  }
   0xf   :  { %v444_v10 = vld [vmem:[%s626_s3 + $0x30] sm:$0xff]   ;;  %v445_v11 = vld [vmem:[%s626_s3 + $0x38] sm:$0xff]   ;;  %v446_v12 = vld [vmem:[%s628_s5] sm:$0xff]  }
  0x10   :  { %400 = vmatpush3.bf16.msra.mxu1 %v441_v7  ;;  %414 = vmatpush3.bf16.msra.mxu0 %v446_v12  ;;  %v447_v13 = vld [vmem:[%s628_s5 + $0x8] sm:$0xff]   ;;  %v448_v14 = vld [vmem:[%s628_s5 + $0x10] sm:$0xff]   ;;  %v449_v15 = vld [vmem:[%s628_s5 + $0x18] sm:$0xff]  }
  0x11   :  { %401 = vmatprep.subr.bf16.mxu1 %v478_v1  ;;  %415 = vmatprep.subr.bf16.mxu0 %v478_v1  ;;  %v450_v16 = vld [vmem:[%s628_s5 + $0x20] sm:$0xff]   ;;  %v451_v17 = vld [vmem:[%s628_s5 + $0x28] sm:$0xff]   ;;  %v452_v27 = vld [vmem:[%s628_s5 + $0x30] sm:$0xff]  }
  0x12   :  { %v342_v18 = vld [vmem:[%s625_s2] ss:$0 sm:$0xff]  ;;  %v453_v28 = vld [vmem:[%s628_s5 + $0x38] sm:$0xff]   ;;  %s480_s5 = smov [#allocation2]  }
  0x13   :  { %v346_v29 = vld [vmem:[%s627_s4] ss:$0 sm:$0xff]  ;;  %s334_s16 = sshll.u32 %s480_s5, 4  ;;  %s335_s16 = int_to_ptr.vmem [resolvable:$true] %s334_s16 }
  0x14   :  { %402 = vmatpush3.bf16.msra.mxu1 %v442_v8  ;;  %416 = vmatpush3.bf16.msra.mxu0 %v447_v13  ;;  %v355_v38 = vld [vmem:[%s629_s6] ss:$0 sm:$0xff]  ;;  %s454_s4 = scalar_lea.vmem %s335_s16, 128  ;;  %p459_p1 = scmp.lt.s32.totalorder %s335_s16, %s335_s16 }
  0x15   :  { %403 = vmatprep.subr.bf16.mxu1 %v478_v1  ;;  %417 = vmatprep.subr.bf16.mxu0 %v478_v1  ;;  %p455_p0 = scmp.ne.s32.totalorder %s335_s16, %s454_s4  ;;  %p460_p2 = scmp.lt.s32.totalorder %s454_s4, %s454_s4 }
  0x17   :  { %p461_p3 = por %p460_p2, %p459_p1 }
  0x18   :  { %404 = vmatpush3.bf16.msra.mxu1 %v443_v9  ;;  %418 = vmatpush3.bf16.msra.mxu0 %v448_v14 }
  0x19   :  { %405 = vmatprep.subr.bf16.mxu1 %v478_v1  ;;  %419 = vmatprep.subr.bf16.mxu0 %v478_v1  ;;  %p462_p4 = pnand %p461_p3, %p455_p0 }
  0x1c   :  { %406 = vmatpush3.bf16.msra.mxu1 %v444_v10  ;;  %420 = vmatpush3.bf16.msra.mxu0 %v449_v15 }
  0x1d   :  { %407 = vmatprep.subr.bf16.mxu1 %v478_v1  ;;  %421 = vmatprep.subr.bf16.mxu0 %v478_v1 }
  0x20   :  { %408 = vmatpush3.bf16.msra.mxu1 %v445_v11  ;;  %422 = vmatpush3.bf16.msra.mxu0 %v450_v16 }
  0x21   :  { %423 = vmatprep.subr.bf16.mxu0 %v478_v1 }
  0x24   :  { %424 = vmatpush3.bf16.msra.mxu0 %v451_v17 }
  0x25   :  { %425 = vmatprep.subr.bf16.mxu0 %v478_v1 }
  0x28   :  { %426 = vmatpush3.bf16.msra.mxu0 %v452_v27 }
  0x29   :  { %427 = vmatprep.subr.bf16.mxu0 %v478_v1 }
  0x2c   :  { %428 = vmatpush3.bf16.msra.mxu0 %v453_v28 }
  0xdc   :  { %v90_v19 = vpop.f32.mrb[0].mxu0 }
  0xdd   :  { %v91_v20 = vadd.f32 %v342_v18, %v90_v19  ;;  %v391_v21 = vpop.f32.mrb[1].mxu0 }
  0xde   :  { %v93_v22 = vpop.f32.mrb[2].mxu0 }
  0xdf   :  { %vm96_vm2 = vcmp.gt.f32.partialorder %v91_v20, 0.0  ;;  %v97_v23 = vmul.f32 0.01, %v91_v20  ;;  %v392_v24 = vpop.f32.mrb[3].mxu0 }
  0xe1   :  { %v98_v25 = vsel %vm96_vm2, %v91_v20, %v97_v23 }
  0xe2   :  { %v99_v26 = vpack.c.bf16 %v98_v25, %v98_v25 }
  0xe4   :  { %410 = vmatmul.mubr.bf16.vlgmr.msra.gmra.mrb[0].mxu1 %v99_v26 }
 0x1b7   :  { %v205_v30 = vpop.f32.mrb[0].mxu1 }
 0x1b8   :  { %v206_v31 = vadd.f32 %v346_v29, %v205_v30  ;;  %v411_v32 = vpop.f32.mrb[1].mxu1 }
 0x1b9   :  { %v208_v33 = vpop.f32.mrb[2].mxu1 }
 0x1ba   :  { %vm211_vm3 = vcmp.gt.f32.partialorder %v206_v31, 0.0  ;;  %v212_v34 = vmul.f32 0.01, %v206_v31  ;;  %v412_v35 = vpop.f32.mrb[3].mxu1 }
 0x1bc   :  { %v213_v36 = vsel %vm211_vm3, %v206_v31, %v212_v34 }
 0x1bd   :  { %v214_v37 = vpack.c.bf16 %v213_v36, %v213_v36 }
 0x1bf   :  { %430 = vmatmul.mubr.bf16.vlgmr.msra.gmra.mrb[4].mxu0 %v214_v37 }
 0x292   :  { %v320_v39 = vpop.f32.mrb[4].mxu0 }
 0x293   :  { %v321_v40 = vadd.f32 %v355_v38, %v320_v39  ;;  %v431_v41 = vpop.f32.mrb[5].mxu0 }
 0x294   :  { %v323_v42 = vpop.f32.mrb[6].mxu0 }
 0x295   :  { %v432_v43 = vpop.f32.mrb[7].mxu0  ;;  %327 = vst.msk [vmem:[#allocation2] sm:$0xff] %vm326_vm4, %v321_v40 }
 0x296   :  { %465 = shalt.err (!%p462_p4)
}
 0x297   :  { %s466_s6 = scalar_lea.hbm %s630_s7, 128 }
 0x298   :  { %p467_p5 = scmp.ne.s32.totalorder %s630_s7, %s466_s6  ;;  %p470_p6 = scmp.lt.u32.totalorder %s466_s6, %s630_s7 }
 0x29a   :  { %p472_p7 = pnand %p470_p6, %p467_p5 }
 0x29c   :  { %475 = shalt.err (!%p472_p7)
}
 0x29d   :  { %337 = dma.vmem_to_hbm [thread:$0]  %s335_s16, 128, %s630_s7, [#allocation3]  }
 0x29e   :  { %476 = dma.done.wait [#allocation3], 128  }
 0x29f   :  { %477 = vsyncadd [#allocation3], 4294967168 }
 0x2a0   :  { %341 = vsyncpa [#allocation3], 1 }

</bundles_post_ra>
